<compile_context>
chip_gen: v7x
topology: tpu7x:2x2x1
jax: 0.10.0
libtpu: 0.0.40
codegen_flags: <defaults>
</compile_context>

<pallas_src>
import functools

import jax
import jax.numpy as jnp
from jax import lax
from jax.experimental import pallas as pl
from jax.experimental.pallas import tpu as pltpu


def _round_up(v, m):
    return -(-v // m) * m


def _upsample_nearest_kernel(x_ref, r_ref, o_ref, *, s):
    """x_ref: (TR, W); r_ref: (W, W*s) 0/1 matrix; o_ref: (TR, s*W*s)."""
    # Width replication on the MXU: output column ow picks input column ow // s.
    # R is 0/1 with exactly one nonzero per column; HIGHEST precision keeps the
    # f32 path bit-exact (bf16x3 decomposition reconstructs x * 1.0 exactly).
    xw = jnp.dot(
        x_ref[...],
        r_ref[...],
        preferred_element_type=jnp.float32,
        precision=lax.Precision.HIGHEST,
    ).astype(o_ref.dtype)                                   # (TR, W*s), lane-dense
    # Height replication: s copies along the lane dim -> one unmasked full-tile
    # store of a sublane- and lane-dense (TR, s*W*s) block.
    o_ref[...] = jnp.concatenate([xw] * s, axis=-1)


def _pick_row_block(nr, w, s, itemsize):
    """Rows per grid step: large VMEM tiles, >= 2 steps, v7x-safe budget."""
    lane_in = _round_up(w, 128)
    lane_r = _round_up(w * s, 128)
    lane_out = _round_up(s * w * s, 128)
    # Double-buffered (input + R + output) tiles; conservative so it fits
    # v7x's 64 MiB physical VMEM with headroom (v5e/v6e have 128 MiB).
    budget = 16 * 1024 * 1024

    def fits(tr):
        in_b = _round_up(tr, 8) * lane_in * itemsize
        out_b = _round_up(tr, 8) * lane_out * itemsize
        r_b = _round_up(w, 8) * lane_r * itemsize
        return 2 * (in_b + out_b + r_b) <= budget

    # Prefer >= 2 grid steps (v7x has 2 TensorCores) and a multiple-of-8 row
    # block (sublane constraint on the second-to-last dim of the blocks).
    cap = min(nr // 2 if nr >= 16 else nr, 2048)
    tr = (cap // 8) * 8
    while tr >= 8:
        if nr % tr == 0 and fits(tr):
            return tr
        tr -= 8
    # Tiny / oddly shaped inputs: one block spanning all rows is always legal
    # (block dim == full array dim).
    return nr


def upsample_nearest(x, scale_factor):
    """x: (N, C, H, W) -> (N, C, H*s, W*s), nearest neighbor, integer scale."""
    s = int(scale_factor)
    # TODO(synk): non-integer scale factors (per-output-pixel source-index
    # recompute) are not implemented; integer scale matches repeat-interleave.
    assert s == scale_factor and s >= 1, "integer scale_factor only"
    # TODO(synk): integer dtypes would need a non-MXU width-replication path
    # (v7x MXU has no integer mode); float feature maps are the intended use.
    n, c, h, w = x.shape
    if s == 1:
        return x

    nr = n * c * h
    ws = w * s
    tr = _pick_row_block(nr, w, s, x.dtype.itemsize)

    # Free row-major collapse: nearest upsample of (N, C, H, W) is exactly
    # out2[r, col] = in2[r // s, col // s] on the flattened (N*C*H, W) rows.
    x2 = x.reshape(nr, w)

    # 0/1 width-replication matrix: R[iw, ow] = 1 iff ow // s == iw.
    r = (jnp.arange(ws)[None, :] // s == jnp.arange(w)[:, None]).astype(x.dtype)

    out2 = pl.pallas_call(
        functools.partial(_upsample_nearest_kernel, s=s),
        out_shape=jax.ShapeDtypeStruct((nr, s * ws), x.dtype),
        grid=(nr // tr,),
        in_specs=[
            pl.BlockSpec((tr, w), lambda i: (i, 0)),
            # Same block index every step -> stays resident in VMEM (no re-DMA).
            pl.BlockSpec((w, ws), lambda i: (0, 0)),
        ],
        out_specs=pl.BlockSpec((tr, s * ws), lambda i: (i, 0)),
        compiler_params=pltpu.CompilerParams(
            dimension_semantics=("parallel",),
            # Raise the scoped-VMEM default (16 MiB v5e / 32 MiB v6e,v7x) so the
            # coarsened tiles are allowed; stays well under v7x's 64 MiB.
            vmem_limit_bytes=48 * 1024 * 1024,
        ),
    )(x2, r)

    # Free row-major collapse: (N*C*H, s*W*s) == (N, C, H, s, W*s)
    #                       -> (N, C, H*s, W*s).
    return out2.reshape(n, c, h * s, w * s)


class Upsample:
    """Mirror of the PyTorch `upsample` module (no parameters)."""

    def __init__(self, scale_factor):
        self.scale_factor = scale_factor

    def __call__(self, x):
        return upsample_nearest(x, self.scale_factor)


if __name__ == "__main__":
    key = jax.random.PRNGKey(0)
    N, C, H, W = 2, 4, 16, 16
    scale = 2

    x = jax.random.normal(key, (N, C, H, W), dtype=jnp.float32)

    model = Upsample(scale_factor=scale)
    y = jax.block_until_ready(model(x))

    # Reference: nearest-neighbor upsample == repeat-interleave along H and W.
    ref = jnp.repeat(jnp.repeat(x, scale, axis=2), scale, axis=3)

    assert y.shape == (N, C, H * scale, W * scale), y.shape
    assert y.dtype == x.dtype
    assert jnp.allclose(y, ref), "mismatch vs reference nearest upsample"

    print("KERNEL_OK")
</pallas_src>

<mosaic_0001>
module attributes {stable_mosaic.version = 11 : i64} {
  func.func @_upsample_nearest_kernel(%arg0: i32, %arg1: memref<64x16xf32, #tpu.memory_space<vmem>>, %arg2: memref<16x32xf32, #tpu.memory_space<vmem>>, %arg3: memref<64x64xf32, #tpu.memory_space<vmem>>) attributes {dimension_semantics = [#tpu.dimension_semantics<parallel>], iteration_bounds = array<i64: 2>, scalar_prefetch = 0 : i64, scratch_operands = 0 : i64, tpu.core_type = #tpu.core_type<tc>, window_params = [{transform_indices = @transform_0, window_bounds = array<i64: 64, 16>}, {pipeline_mode = #tpu.pipeline_mode<synchronous>, transform_indices = @transform_1, window_bounds = array<i64: 16, 32>}, {transform_indices = @transform_2, window_bounds = array<i64: 64, 64>}]} {
    %c0 = arith.constant 0 : index
    %c0_0 = arith.constant 0 : index
    %0 = vector.load %arg1[%c0, %c0_0] : memref<64x16xf32, #tpu.memory_space<vmem>>, vector<64x16xf32>
    %c0_1 = arith.constant 0 : index
    %c0_2 = arith.constant 0 : index
    %1 = vector.load %arg2[%c0_1, %c0_2] : memref<16x32xf32, #tpu.memory_space<vmem>>, vector<16x32xf32>
    %cst = arith.constant dense<0.000000e+00> : vector<64x32xf32>
    %2 = tpu.matmul %0, %1, %cst {dimension_numbers = #tpu.dot_dimension_numbers<[1], [0], [0], [1], [0, 0, 1, 1], [], []>, precision = #tpu.contract_precision<fp32>} : vector<64x16xf32>, vector<16x32xf32>, vector<64x32xf32> -> vector<64x32xf32>
    %3 = tpu.concatenate %2, %2 in 1 : vector<64x32xf32>, vector<64x32xf32> -> vector<64x64xf32>
    %c0_3 = arith.constant 0 : index
    %c0_4 = arith.constant 0 : index
    %4 = vector.load %arg3[%c0_3, %c0_4] : memref<64x64xf32, #tpu.memory_space<vmem>>, vector<64x64xf32>
    tpu.vector_store %arg3[%c0_3, %c0_4], %3 {strides = array<i32>} : memref<64x64xf32, #tpu.memory_space<vmem>>, vector<64x64xf32>,
    return
  }
  func.func @transform_0(%arg0: i32) -> (i32, i32) {
    %c0_i32 = arith.constant 0 : i32
    %c0_i32_0 = arith.constant 0 : i32
    return %arg0, %c0_i32 : i32, i32
  }
  func.func @transform_1(%arg0: i32) -> (i32, i32) {
    %c0_i32 = arith.constant 0 : i32
    %c0_i32_0 = arith.constant 0 : i32
    %c0_i32_1 = arith.constant 0 : i32
    return %c0_i32, %c0_i32_0 : i32, i32
  }
  func.func @transform_2(%arg0: i32) -> (i32, i32) {
    %c0_i32 = arith.constant 0 : i32
    %c0_i32_0 = arith.constant 0 : i32
    return %arg0, %c0_i32 : i32, i32
  }
}

</mosaic_0001>

<bundles_post_ra>
// kernel: tpu_custom_call.1
= control target key start
LH: loop header
LB: loop body
LE: loop exit
PB: predicated region body
PF: predicated region fallthrough
CT: control target
= control target key end

     0   :  { %s1312_s9 = smov 0   ;;  %s1467_s0 = inlined_call_operand.vmem [shape: f32[128,16], index: 0, kind: input, shape index: {}]   ;;  %s1468_s1 = inlined_call_operand.vmem [shape: f32[16,32], index: 1, kind: input, shape index: {}]   ;;  %s1469_s2 = inlined_call_operand.vmem [shape: f32[128,64], index: 2, kind: output, shape index: {}]  }
   0x1 LB: > { %s1048_s10 = sadd.s32 4294967295, %s1294_s9   ;;  %p1052_p0 = scmp.ge.s32.totalorder %s1294_s9, 1  ;;  %s1294_s9 = sphi %s1312_s9, %s12_s9  }
   0x2   : > { %p113_p1 = scmp.lt.s32.totalorder %s1294_s9, 3 }
   0x4   : > { %p114_p2 = pnand %p1052_p0, %p113_p1 }
   0x5   : > { %v155_v0 = vld [vmem:[%s1468_s1] sm:$0xff] (!%p114_p2)  ;;  %v156_v1 = vld [vmem:[%s1468_s1 + $0x8] sm:$0xff] (!%p114_p2)  ;;  %s1053_s15 = sshll.u32 (!%p114_p2), %s1048_s10, 3  ;;  %vm157_vm0 = vcmask (!%p114_p2), 130048   ;;  %s1296_s20 = smov (!%p114_p2), 32   ;;  %vm974_vm1 = vcmask (!%p114_p2), 261120  }
   0x6   : > { %117 = sbr.rel (%p114_p2) target bundleno = 408 (0x198), region = 28  ;;  %v183_v2 = vand.u32 (!%p114_p2), 4294901760, %v155_v0  ;;  %v186_v3 = vand.u32 (!%p114_p2), 4294901760, %v156_v1  ;;  %p136_p3 = scmp.lt.s32.totalorder (!%p114_p2), %s1053_s15, 15  ;;  %vm983_vm2 = vcmask (!%p114_p2), 523264  }
   0x8   : > { %v1326_v4 = vpack.c.bf16 (!%p114_p2), %v186_v3, %v183_v2  ;;  %v1330_v5 = vsub.f32 (!%p114_p2), %v155_v0, %v183_v2  ;;  %v1332_v6 = vsub.f32 (!%p114_p2), %v156_v1, %v186_v3 }
   0xa   : > { %1228 = vmatprep.subr.bf16.mxu0 (!%p114_p2), %v1326_v4  ;;  %1216 = vmatprep.subr.bf16.mxu1 (!%p114_p2), %v1326_v4  ;;  %v332_v7 = vand.u32 (!%p114_p2), 4294901760, %v1330_v5  ;;  %v339_v8 = vand.u32 (!%p114_p2), 4294901760, %v1332_v6  ;;  %v1223_v62 = vpack.c.bf16 (!%p114_p2), %v1332_v6, %v1330_v5 }
   0xb   : > { %1230 = vmatpush3.bf16.msra.mxu0 (!%p114_p2), %v1326_v4  ;;  %1218 = vmatpush3.bf16.msra.mxu1 (!%p114_p2), %v1326_v4 }
   0xc   : > { %v333_v11 = vsub.f32 (!%p114_p2), %v1330_v5, %v332_v7  ;;  %v340_v12 = vsub.f32 (!%p114_p2), %v1332_v6, %v339_v8  ;;  %v1231_v14 = vpack.c.bf16 (!%p114_p2), %v339_v8, %v332_v7 }
   0xd   : > { %s1471_s15 = smov (!%p136_p3, %s1053_s15), 15 }
   0xe   : > { %s1054_s16 = sshll.u32 %s1471_s15, 3  ;;  %v334_v23 = vand.u32 4294901760, %v333_v11  ;;  %v341_v24 = vand.u32 4294901760, %v340_v12  ;;  %1232 = vmatprep.subr.bf16.mxu0 %v1231_v14 }
   0xf   : > { %s139_s19 = scalar_lea.vmem %s1467_s0, %s1054_s16  ;;  %s145_s23 = scalar_lea.vmem %s1469_s2, %s1054_s16 }
  0x10   : > { %v147_v9 = vld [vmem:[%s139_s19] sm:$0xff]  ;;  %v148_v10 = vld [vmem:[%s139_s19 + $0x8] sm:$0xff]  ;;  %v149_v13 = vld [vmem:[%s139_s19 + $0x10] sm:$0xff]  ;;  %v1219_v32 = vpack.c.bf16 %v341_v24, %v334_v23 }
  0x11   : > { %v159_v15 = vsel %vm157_vm0, %v147_v9, 0  ;;  %v162_v16 = vsel %vm157_vm0, %v148_v10, 0  ;;  %v165_v17 = vsel %vm157_vm0, %v149_v13, 0  ;;  %v150_v18 = vld [vmem:[%s139_s19 + $0x18] sm:$0xff]  ;;  %v151_v19 = vld [vmem:[%s139_s19 + $0x20] sm:$0xff]  ;;  %v152_v20 = vld [vmem:[%s139_s19 + $0x28] sm:$0xff] }
  0x12   : > { %v1351_v21 = vand.u32 4294901760, %v159_v15  ;;  %v1353_v22 = vand.u32 4294901760, %v162_v16  ;;  %v153_v25 = vld [vmem:[%s139_s19 + $0x30] sm:$0xff]  ;;  %v1355_v26 = vand.u32 4294901760, %v165_v17  ;;  %v168_v27 = vsel %vm157_vm0, %v150_v18, 0  ;;  %v154_v34 = vld [vmem:[%s139_s19 + $0x38] sm:$0xff]  ;;  %1220 = vmatprep.subr.bf16.mxu1 %v1219_v32 }
  0x13   : > { %v171_v28 = vsel %vm157_vm0, %v151_v19, 0  ;;  %v174_v29 = vsel %vm157_vm0, %v152_v20, 0  ;;  %v1366_v33 = vand.u32 4294901760, %v168_v27  ;;  %v177_v38 = vsel %vm157_vm0, %v153_v25, 0 }
  0x14   : > { %v1361_v30 = vsub.f32 %v159_v15, %v1351_v21  ;;  %v1364_v31 = vsub.f32 %v162_v16, %v1353_v22  ;;  %v1369_v35 = vsub.f32 %v165_v17, %v1355_v26  ;;  %v1371_v36 = vand.u32 4294901760, %v171_v28 }
  0x15   : > { %v1373_v37 = vand.u32 4294901760, %v174_v29  ;;  %v1379_v41 = vsub.f32 %v168_v27, %v1366_v33  ;;  %v1381_v42 = vand.u32 4294901760, %v177_v38  ;;  %v180_v46 = vsel %vm157_vm0, %v154_v34, 0 }
  0x16   : > { %v251_v39 = vand.u32 4294901760, %v1361_v30  ;;  %v261_v40 = vand.u32 4294901760, %v1364_v31  ;;  %v271_v43 = vand.u32 4294901760, %v1369_v35  ;;  %v1385_v44 = vsub.f32 %v171_v28, %v1371_v36 }
  0x17   : > { %v1388_v45 = vsub.f32 %v174_v29, %v1373_v37  ;;  %v281_v49 = vand.u32 4294901760, %v1379_v41  ;;  %v1395_v50 = vsub.f32 %v177_v38, %v1381_v42  ;;  %v1400_v54 = vand.u32 4294901760, %v180_v46 }
  0x18   : > { %1171 = vmatprep.mubr.f32.mxu0 %v251_v39  ;;  %v252_v47 = vsub.f32 %v1361_v30, %v251_v39  ;;  %v262_v48 = vsub.f32 %v1364_v31, %v261_v40  ;;  %v272_v51 = vsub.f32 %v1369_v35, %v271_v43  ;;  %v291_v52 = vand.u32 4294901760, %v1385_v44 }
  0x19   : > { %1172 = vmatmul.mubr.f32.vlgmr.msra.gmra.mrb[0].mxu0 %v261_v40  ;;  %v301_v53 = vand.u32 4294901760, %v1388_v45  ;;  %v282_v57 = vsub.f32 %v1379_v41, %v281_v49  ;;  %v311_v58 = vand.u32 4294901760, %v1395_v50  ;;  %v320_v61 = vsub.f32 %v180_v46, %v1400_v54 }
  0x1a   : > { %v253_v55 = vand.u32 4294901760, %v252_v47  ;;  %1174 = vmatprep.mubr.f32.mxu0 %v271_v43  ;;  %v263_v56 = vand.u32 4294901760, %v262_v48  ;;  %1234 = vmatpush3.bf16.msra.mxu0 %v1231_v14  ;;  %v273_v59 = vand.u32 4294901760, %v272_v51  ;;  %v292_v60 = vsub.f32 %v1385_v44, %v291_v52 }
  0x1b   : > { %1236 = vmatprep.subr.bf16.mxu0 %v1326_v4  ;;  %v283_v63 = vand.u32 4294901760, %v282_v57  ;;  %v302_v0 = vsub.f32 %v1388_v45, %v301_v53  ;;  %v321_v1 = vand.u32 4294901760, %v320_v61  ;;  %v312_v3 = vsub.f32 %v1395_v50, %v311_v58 }
  0x1c   : > { %1123 = vmatprep.mubr.f32.mxu1 %v253_v55  ;;  %v293_v2 = vand.u32 4294901760, %v292_v60 }
  0x1d   : > { %1124 = vmatmul.mubr.f32.vlgmr.msra.gmra.mrb[0].mxu1 %v263_v56  ;;  %1175 = vmatmul.mubr.f32.gmra.mrb[2].mxu0 %v281_v49  ;;  %v303_v7 = vand.u32 4294901760, %v302_v0  ;;  %v322_v5 = vsub.f32 %v320_v61, %v321_v1  ;;  %v313_v6 = vand.u32 4294901760, %v312_v3 }
  0x1e   : > { %1222 = vmatpush3.bf16.msra.mxu1 %v1219_v32  ;;  %1126 = vmatprep.mubr.f32.mxu1 %v273_v59 }
  0x1f   : > { %1177 = vmatprep.mubr.f32.mxu0 %v291_v52  ;;  %1224 = vmatprep.subr.bf16.mxu1 %v1223_v62  ;;  %v323_v8 = vand.u32 4294901760, %v322_v5 }
  0x21   : > { %1127 = vmatmul.mubr.f32.gmra.mrb[2].mxu1 %v283_v63  ;;  %1178 = vmatmul.mubr.f32.gmra.mrb[4].mxu0 %v301_v53 }
  0x22   : > { %1129 = vmatprep.mubr.f32.mxu1 %v293_v2  ;;  %1180 = vmatprep.mubr.f32.mxu0 %v311_v58 }
  0x25   : > { %1130 = vmatmul.mubr.f32.gmra.mrb[4].mxu1 %v303_v7  ;;  %1181 = vmatmul.mubr.f32.gmra.mrb[6].mxu0 %v321_v1 }
  0x26   : > { %1132 = vmatprep.mubr.f32.mxu1 %v313_v6  ;;  %1187 = vmatprep.mubr.f32.mxu0 %v1351_v21 }
  0x29   : > { %1133 = vmatmul.mubr.f32.gmra.mrb[6].mxu1 %v323_v8  ;;  %1188 = vmatmul.mubr.f32.vlgmr.msra.gmra.mrb[0].mxu0 %v1353_v22 }
  0x2a   : > { %1139 = vmatprep.mubr.f32.mxu1 %v1351_v21  ;;  %1190 = vmatprep.mubr.f32.mxu0 %v1355_v26 }
  0x2b   : > { %1238 = vmatpush3.bf16.msra.mxu0 %v1326_v4 }
  0x2d   : > { %1140 = vmatmul.mubr.f32.vlgmr.msra.gmra.mrb[0].mxu1 %v1353_v22  ;;  %1191 = vmatmul.mubr.f32.gmra.mrb[2].mxu0 %v1366_v33 }
  0x2e   : > { %1226 = vmatpush3.bf16.msra.mxu1 %v1223_v62  ;;  %1142 = vmatprep.mubr.f32.mxu1 %v1355_v26 }
  0x2f   : > { %1193 = vmatprep.mubr.f32.mxu0 %v1371_v36 }
  0x31   : > { %1143 = vmatmul.mubr.f32.gmra.mrb[2].mxu1 %v1366_v33  ;;  %1194 = vmatmul.mubr.f32.gmra.mrb[4].mxu0 %v1373_v37 }
  0x32   : > { %1145 = vmatprep.mubr.f32.mxu1 %v1371_v36  ;;  %1196 = vmatprep.mubr.f32.mxu0 %v1381_v42 }
  0x35   : > { %1146 = vmatmul.mubr.f32.gmra.mrb[4].mxu1 %v1373_v37  ;;  %1197 = vmatmul.mubr.f32.gmra.mrb[6].mxu0 %v1400_v54 }
  0x36   : > { %1148 = vmatprep.mubr.f32.mxu1 %v1381_v42  ;;  %1203 = vmatprep.mubr.f32.mxu0 %v1351_v21 }
  0x39   : > { %1149 = vmatmul.mubr.f32.gmra.mrb[6].mxu1 %v1400_v54  ;;  %1204 = vmatmul.mubr.f32.vlgmr.msra.gmra.mrb[0].mxu0 %v1353_v22 }
  0x3a   : > { %1155 = vmatprep.mubr.f32.mxu1 %v1361_v30  ;;  %1206 = vmatprep.mubr.f32.mxu0 %v1355_v26 }
  0x3d   : > { %1156 = vmatmul.mubr.f32.vlgmr.msra.gmra.mrb[0].mxu1 %v1364_v31  ;;  %1207 = vmatmul.mubr.f32.gmra.mrb[2].mxu0 %v1366_v33 }
  0x3e   : > { %1158 = vmatprep.mubr.f32.mxu1 %v1369_v35  ;;  %1209 = vmatprep.mubr.f32.mxu0 %v1371_v36 }
  0x41   : > { %1159 = vmatmul.mubr.f32.gmra.mrb[2].mxu1 %v1379_v41  ;;  %1210 = vmatmul.mubr.f32.gmra.mrb[4].mxu0 %v1373_v37 }
  0x42   : > { %1161 = vmatprep.mubr.f32.mxu1 %v1385_v44  ;;  %1212 = vmatprep.mubr.f32.mxu0 %v1381_v42 }
  0x45   : > { %1162 = vmatmul.mubr.f32.gmra.mrb[4].mxu1 %v1388_v45  ;;  %1213 = vmatmul.mubr.f32.gmra.mrb[6].mxu0 %v1400_v54 }
  0x46   : > { %1164 = vmatprep.mubr.f32.mxu1 %v1395_v50 }
  0x49   : > { %1165 = vmatmul.mubr.f32.gmra.mrb[6].mxu1 %v320_v61 }
 0x10c   : > { %v1205_v4 = vpop.f32.mrb[0].mxu0 }
 0x10d   : > { %v896_v9 = vpop.f32.mrb[1].mxu0 }
 0x110   : > { %v1157_v10 = vpop.f32.mrb[0].mxu1  ;;  %v1208_v11 = vpop.f32.mrb[2].mxu0 }
 0x111   : > { %v1239_v12 = vadd.f32 %v1205_v4, %v1157_v10  ;;  %v524_v13 = vpop.f32.mrb[1].mxu1  ;;  %v908_v14 = vpop.f32.mrb[3].mxu0 }
 0x112   : > { %v1240_v15 = vadd.f32 %v896_v9, %v524_v13 }
 0x113   : > { %952 = vrot.lane.b32.xlu0 %v1239_v12, %s1296_s20 }
 0x114   : > { %v1160_v16 = vpop.f32.mrb[2].mxu1  ;;  %v1211_v17 = vpop.f32.mrb[4].mxu0 }
 0x115   : > { %v1241_v18 = vadd.f32 %v1208_v11, %v1160_v16  ;;  %v538_v19 = vpop.f32.mrb[3].mxu1  ;;  %v920_v20 = vpop.f32.mrb[5].mxu0 }
 0x116   : > { %v1242_v21 = vadd.f32 %v908_v14, %v538_v19 }
 0x117   : > { %950 = vrot.lane.b32.xlu0 %v1240_v15, %s1296_s20  ;;  %956 = vrot.lane.b32.xlu1 %v1241_v18, %s1296_s20 }
 0x118   : > { %v1163_v22 = vpop.f32.mrb[4].mxu1  ;;  %v1214_v23 = vpop.f32.mrb[6].mxu0 }
 0x119   : > { %v1243_v24 = vadd.f32 %v1211_v17, %v1163_v22  ;;  %v552_v25 = vpop.f32.mrb[5].mxu1  ;;  %v932_v26 = vpop.f32.mrb[7].mxu0 }
 0x11a   : > { %v1244_v27 = vadd.f32 %v920_v20, %v552_v25 }
 0x11b   : > { %954 = vrot.lane.b32.xlu1 %v1242_v21, %s1296_s20 }
 0x11c   : > { %958 = vrot.lane.b32.xlu0 %v1244_v27, %s1296_s20  ;;  %v1166_v28 = vpop.f32.mrb[6].mxu1 }
 0x11d   : > { %v1245_v29 = vadd.f32 %v1214_v23, %v1166_v28  ;;  %v566_v30 = vpop.f32.mrb[7].mxu1 }
 0x11e   : > { %v1246_v31 = vadd.f32 %v932_v26, %v566_v30 }
 0x11f   : > { %960 = vrot.lane.b32.xlu1 %v1243_v24, %s1296_s20 }
 0x120   : > { %962 = vrot.lane.b32.xlu0 %v1246_v31, %s1296_s20 }
 0x123   : > { %964 = vrot.lane.b32.xlu1 %v1245_v29, %s1296_s20 }
 0x185   : > { %v953_v32 = vpop.permute.xlu0 %952 }
 0x186   : > { %v976_v33 = vsel %vm974_vm1, %v1239_v12, %v953_v32 }
 0x187   : > { %985 = vst.msk [vmem:[%s145_s23 + $0x8] sm:$0xff] %vm983_vm2, %v976_v33 }
 0x189   : > { %v951_v34 = vpop.permute.xlu0 %950  ;;  %v957_v35 = vpop.permute.xlu1 %956 }
 0x18a   : > { %v975_v36 = vsel %vm974_vm1, %v1240_v15, %v951_v34  ;;  %v978_v37 = vsel %vm974_vm1, %v1241_v18, %v957_v35 }
 0x18b   : > { %984 = vst.msk [vmem:[%s145_s23] sm:$0xff] %vm983_vm2, %v975_v36  ;;  %987 = vst.msk [vmem:[%s145_s23 + $0x18] sm:$0xff] %vm983_vm2, %v978_v37 }
 0x18d   : > { %v955_v38 = vpop.permute.xlu1 %954 }
 0x18e   : > { %v977_v39 = vsel %vm974_vm1, %v1242_v21, %v955_v38  ;;  %v959_v40 = vpop.permute.xlu0 %958 }
 0x18f   : > { %986 = vst.msk [vmem:[%s145_s23 + $0x10] sm:$0xff] %vm983_vm2, %v977_v39  ;;  %v979_v41 = vsel %vm974_vm1, %v1244_v27, %v959_v40 }
 0x190   : > { %988 = vst.msk [vmem:[%s145_s23 + $0x20] sm:$0xff] %vm983_vm2, %v979_v41 }
 0x191   : > { %v961_v42 = vpop.permute.xlu1 %960 }
 0x192   : > { %v980_v43 = vsel %vm974_vm1, %v1243_v24, %v961_v42  ;;  %v963_v44 = vpop.permute.xlu0 %962 }
 0x193   : > { %989 = vst.msk [vmem:[%s145_s23 + $0x28] sm:$0xff] %vm983_vm2, %v980_v43  ;;  %v981_v45 = vsel %vm974_vm1, %v1246_v31, %v963_v44 }
 0x194   : > { %990 = vst.msk [vmem:[%s145_s23 + $0x30] sm:$0xff] %vm983_vm2, %v981_v45 }
 0x195   : > { %v965_v46 = vpop.permute.xlu1 %964 }
 0x196   : > { %v982_v47 = vsel %vm974_vm1, %v1245_v29, %v965_v46 }
 0x197   : > { %991 = vst.msk [vmem:[%s145_s23 + $0x38] sm:$0xff] %vm983_vm2, %v982_v47 }
 0x198 PF: > { %s12_s9 = sadd.s32 1, %s1294_s9  }
 0x199   : > { %p9_p4 = scmp.ge.s32.totalorder %s12_s9, 4  }
 0x19b   :  { %11 = sbr.rel (!%p9_p4) target bundleno = 1 (0x1), region = 58 }

</bundles_post_ra>
